<compile_context>
chip_gen: v5e
topology: v5e:2x2
jax: 0.10.0
libtpu: 0.0.40
codegen_flags: <defaults>
</compile_context>

<pallas_src>
import functools

import jax
import jax.numpy as jnp
import numpy as np
from jax.experimental import pallas as pl
from jax.experimental.pallas import tpu as pltpu


# ----------------------------- Haar matrix (glue) -----------------------------
def haar_1d_matrix(n):
    if np.log2(n) % 1 > 0:
        raise ValueError("n must be a power of 2")
    if n == 1:
        return np.array([[1]])
    H_next = haar_1d_matrix(n // 2)
    upper = np.kron(H_next, [1, 1])
    lower = np.kron(np.eye(len(H_next)), [1, -1])
    return np.vstack((upper, lower))


def haar_matrix(N):
    H = haar_1d_matrix(N).astype(np.float32)
    norms = np.linalg.norm(H, axis=1, keepdims=True)
    return (H / norms).astype(np.float32)


# ------------------------------- Pallas kernel --------------------------------
def haar_lif_kernel(w_ref, x_ref, o_ref, mem_ref, *, inv_tau, v_threshold):
    # w_ref: (N*M, N*M) resident, single-buffered   x_ref/o_ref: (1, bc_tile, N*M)
    # mem_ref: (bc_tile, N*M) persistent f32 VMEM scratch (LIF membrane)
    t = pl.program_id(1)

    @pl.when(t == 0)
    def _():
        mem_ref[...] = jnp.zeros_like(mem_ref)

    # Cast after the DMA (no-op for f32 input; halves HBM reads for bf16 input).
    x = x_ref[0].astype(jnp.float32)                       # (bc_tile, N*M)
    # Inverse Haar over N as one lane-dense MXU matmul: x_flat @ kron(H, I_M).
    # TODO(synk): pin precision=jax.lax.Precision.HIGHEST (or use bf16 operands on
    # v5e) if bit-parity vs. a HIGHEST reference / MXU throughput becomes critical.
    haar = jnp.dot(x, w_ref[...], preferred_element_type=jnp.float32)

    m = mem_ref[...]                                       # single membrane load
    mem = m + (haar - m) * jnp.float32(inv_tau)
    fired = mem > jnp.float32(v_threshold)
    o_ref[0] = fired.astype(o_ref.dtype)                   # spikes are exact 0/1
    mem_ref[...] = jnp.where(fired, 0.0, mem)               # hard reset, same predicate


# ------------------------------ sizing heuristics ------------------------------
def _vmem_capacity_bytes():
    """Per-core VMEM capacity; conservative 64 MiB fallback (v7x per-core)."""
    try:
        cap = getattr(pltpu.get_tpu_info(), "vmem_capacity_bytes", None)
        if cap:
            return int(cap)
    except Exception:
        pass
    return 64 * 1024 * 1024


def _pick_bc_tile(BC, NM, itemsize, max_block_bytes, min_parallel_tiles=2):
    """Largest BC tile that divides BC, respects the dtype sublane multiple
    (8 for 4-byte, 16 for 2-byte), keeps one block under max_block_bytes, and —
    when BC is large enough — leaves >= 2 tiles so the 'parallel' axis can be
    sharded across v7x's two TensorCores."""
    sub = max(8, 32 // max(1, itemsize))          # f32: 8, bf16: 16, int8: 32
    cap = max(sub, min(BC, max_block_bytes // (NM * 4)))
    if BC >= min_parallel_tiles * sub:
        cap = min(cap, BC // min_parallel_tiles)
    for d in range(cap, sub - 1, -1):
        if BC % d == 0 and d % sub == 0:
            return d
    return BC  # full-extent block is always legal


# --------------------------------- wrapper -------------------------------------
def haar1d_inverse(x, H, *, step, tau=2.0, v_threshold=1.0, spike_dtype=None):
    """x: (T*B, C, N, M), H: (N, N).  Returns spikes of shape (T*B, C, N, M)."""
    TB, C, N, M = x.shape
    assert TB % step == 0
    T = step
    BC = (TB // T) * C
    NM = N * M
    spike_dtype = x.dtype if spike_dtype is None else jnp.dtype(spike_dtype)
    # TODO(synk): if NM % 128 != 0 (e.g. N=M=8), fold extra C/B into the lane axis
    # or pad to 128 before calling the kernel to avoid masked partial stores.

    # Pure reshapes only (row-major compatible), native dtype -> zero extra HBM traffic.
    xr = x.reshape(T, BC, NM)

    # out[b, n*M + m] = sum_k x[b, k*M + m] * H[k, n]  <=>  x_flat @ kron(H, I_M)
    W = jnp.kron(jnp.asarray(H, jnp.float32), jnp.eye(M, dtype=jnp.float32))
    w_bytes = NM * NM * 4

    # Generation-aware VMEM budget: ~3/4 of per-core capacity
    # (≈48 MiB on v7x, ≈96 MiB on v5e/v6e's 128 MiB parts).
    vmem_limit = max(32 << 20, (3 * _vmem_capacity_bytes()) // 4)
    # Pipeline footprint ≈ W (single-buffered) + 2x in + 2x out blocks + membrane.
    max_block_bytes = min(8 << 20, max(2 << 20, (vmem_limit - w_bytes) // 6))

    bc_tile = _pick_bc_tile(BC, NM, jnp.dtype(x.dtype).itemsize, max_block_bytes)
    grid = (BC // bc_tile, T)

    kernel = functools.partial(
        haar_lif_kernel, inv_tau=1.0 / tau, v_threshold=v_threshold
    )

    def call(single_buffer_w):
        if single_buffer_w:
            # Constant index map -> one DMA, one buffer (halves W's VMEM footprint).
            w_spec = pl.BlockSpec(
                (NM, NM), lambda i, t: (0, 0), pipeline_mode=pl.Buffered(1)
            )
        else:
            w_spec = pl.BlockSpec((NM, NM), lambda i, t: (0, 0))
        return pl.pallas_call(
            kernel,
            out_shape=jax.ShapeDtypeStruct((T, BC, NM), spike_dtype),
            grid_spec=pltpu.PrefetchScalarGridSpec(
                num_scalar_prefetch=0,
                grid=grid,
                in_specs=[
                    w_spec,                                               # W, resident
                    pl.BlockSpec((1, bc_tile, NM), lambda i, t: (t, i, 0)),
                ],
                out_specs=pl.BlockSpec((1, bc_tile, NM), lambda i, t: (t, i, 0)),
                scratch_shapes=[pltpu.VMEM((bc_tile, NM), jnp.float32)],  # membrane
            ),
            compiler_params=pltpu.CompilerParams(
                # BC tiles are independent ("parallel"); the membrane carry needs
                # T to stay the inner "arbitrary" axis.
                dimension_semantics=("parallel", "arbitrary"),
                vmem_limit_bytes=int(vmem_limit),
            ),
        )(W, xr)

    try:
        out = call(True)
    except Exception:
        # Fallback for toolchains that reject single-buffered pipeline_mode.
        out = call(False)

    return out.reshape(TB, C, N, M)


# ------------------------------ plain-JAX reference ----------------------------
def reference(x, H, *, step, tau=2.0, v_threshold=1.0):
    TB, C, N, M = x.shape
    # H.T @ x  (contract over the second-to-last axis of x)
    haar = jnp.einsum(
        "kn,bckm->bcnm", H, x, precision=jax.lax.Precision.HIGHEST
    )
    haar = haar.reshape(step, TB // step, C, N, M)
    mem = jnp.zeros_like(haar[0])
    outs = []
    for t in range(step):
        mem = mem + (haar[t] - mem) / tau
        fired = mem > v_threshold
        outs.append(jnp.where(fired, 1.0, 0.0))
        mem = jnp.where(fired, 0.0, mem)
    return jnp.stack(outs, 0).reshape(TB, C, N, M)


if __name__ == "__main__":
    step = 4          # T
    B, C, N, M = 2, 4, 16, 16
    v_threshold, tau = 1.0, 2.0

    key = jax.random.PRNGKey(0)
    x = jax.random.normal(key, (step * B, C, N, M), dtype=jnp.float32)
    H = jnp.asarray(haar_matrix(N))

    y = haar1d_inverse(x, H, step=step, tau=tau, v_threshold=v_threshold)
    y = jax.block_until_ready(y)

    y_ref = reference(x, H, step=step, tau=tau, v_threshold=v_threshold)
    np.testing.assert_allclose(np.asarray(y), np.asarray(y_ref), atol=1e-5, rtol=1e-5)

    print("KERNEL_OK")
</pallas_src>

<mosaic_0001>
module attributes {stable_mosaic.version = 11 : i64} {
  func.func @haar_lif_kernel(%arg0: i32, %arg1: i32, %arg2: memref<256x256xf32, #tpu.memory_space<vmem>>, %arg3: memref<1x8x256xf32, #tpu.memory_space<vmem>>, %arg4: memref<1x8x256xf32, #tpu.memory_space<vmem>>, %arg5: memref<8x256xf32, #tpu.memory_space<vmem>>) attributes {dimension_semantics = [#tpu.dimension_semantics<parallel>, #tpu.dimension_semantics<arbitrary>], iteration_bounds = array<i64: 1, 4>, scalar_prefetch = 0 : i64, scratch_operands = 1 : i64, tpu.core_type = #tpu.core_type<tc>, window_params = [{pipeline_mode = #tpu.pipeline_mode<synchronous>, transform_indices = @transform_0, window_bounds = array<i64: 256, 256>}, {transform_indices = @transform_1, window_bounds = array<i64: 1, 8, 256>}, {transform_indices = @transform_2, window_bounds = array<i64: 1, 8, 256>}]} {
    %c0_i32 = arith.constant 0 : i32
    %0 = arith.cmpi eq, %arg1, %c0_i32 : i32
    %1 = arith.extui %0 : i1 to i32
    %c0_i32_0 = arith.constant 0 : i32
    %2 = arith.cmpi ne, %1, %c0_i32_0 : i32
    scf.if %2 {
      %cst_15 = arith.constant 0.000000e+00 : f32
      %22 = vector.broadcast %cst_15 : f32 to vector<8x256xf32>
      %c0_16 = arith.constant 0 : index
      %c0_17 = arith.constant 0 : index
      %23 = vector.load %arg5[%c0_16, %c0_17] : memref<8x256xf32, #tpu.memory_space<vmem>>, vector<8x256xf32>
      tpu.vector_store %arg5[%c0_16, %c0_17], %22 {strides = array<i32>} : memref<8x256xf32, #tpu.memory_space<vmem>>, vector<8x256xf32>,
    } else {
    }
    %c0 = arith.constant 0 : index
    %c0_1 = arith.constant 0 : index
    %c0_2 = arith.constant 0 : index
    %3 = vector.load %arg3[%c0, %c0_1, %c0_2] : memref<1x8x256xf32, #tpu.memory_space<vmem>>, vector<1x8x256xf32>
    %4 = vector.shape_cast %3 : vector<1x8x256xf32> to vector<8x256xf32>
    %c0_3 = arith.constant 0 : index
    %c0_4 = arith.constant 0 : index
    %5 = vector.load %arg2[%c0_3, %c0_4] : memref<256x256xf32, #tpu.memory_space<vmem>>, vector<256x256xf32>
    %cst = arith.constant dense<0.000000e+00> : vector<8x256xf32>
    %6 = tpu.matmul %4, %5, %cst {dimension_numbers = #tpu.dot_dimension_numbers<[1], [0], [0], [1], [0, 0, 1, 1], [], []>} : vector<8x256xf32>, vector<256x256xf32>, vector<8x256xf32> -> vector<8x256xf32>
    %c0_5 = arith.constant 0 : index
    %c0_6 = arith.constant 0 : index
    %7 = vector.load %arg5[%c0_5, %c0_6] : memref<8x256xf32, #tpu.memory_space<vmem>>, vector<8x256xf32>
    %8 = arith.subf %6, %7 : vector<8x256xf32>
    %cst_7 = arith.constant 5.000000e-01 : f32
    %9 = vector.broadcast %cst_7 : f32 to vector<8x256xf32>
    %10 = arith.mulf %8, %9 : vector<8x256xf32>
    %11 = arith.addf %7, %10 : vector<8x256xf32>
    %cst_8 = arith.constant 1.000000e+00 : f32
    %12 = vector.broadcast %cst_8 : f32 to vector<8x256xf32>
    %13 = arith.cmpf ogt, %11, %12 : vector<8x256xf32>
    %14 = arith.extui %13 : vector<8x256xi1> to vector<8x256xi32>
    %15 = arith.sitofp %14 : vector<8x256xi32> to vector<8x256xf32>
    %c0_9 = arith.constant 0 : index
    %c0_10 = arith.constant 0 : index
    %c0_11 = arith.constant 0 : index
    %16 = vector.load %arg4[%c0_9, %c0_10, %c0_11] : memref<1x8x256xf32, #tpu.memory_space<vmem>>, vector<1x8x256xf32>
    %17 = vector.shape_cast %16 : vector<1x8x256xf32> to vector<8x256xf32>
    %18 = vector.shape_cast %15 : vector<8x256xf32> to vector<1x8x256xf32>
    tpu.vector_store %arg4[%c0_9, %c0_10, %c0_11], %18 {strides = array<i32>} : memref<1x8x256xf32, #tpu.memory_space<vmem>>, vector<1x8x256xf32>,
    %cst_12 = arith.constant 0.000000e+00 : f32
    %19 = vector.broadcast %cst_12 : f32 to vector<8x256xf32>
    %20 = arith.select %13, %19, %11 : vector<8x256xi1>, vector<8x256xf32>
    %c0_13 = arith.constant 0 : index
    %c0_14 = arith.constant 0 : index
    %21 = vector.load %arg5[%c0_13, %c0_14] : memref<8x256xf32, #tpu.memory_space<vmem>>, vector<8x256xf32>
    tpu.vector_store %arg5[%c0_13, %c0_14], %20 {strides = array<i32>} : memref<8x256xf32, #tpu.memory_space<vmem>>, vector<8x256xf32>,
    return
  }
  func.func @transform_0(%arg0: i32, %arg1: i32) -> (i32, i32) {
    %c0_i32 = arith.constant 0 : i32
    %c0_i32_0 = arith.constant 0 : i32
    %c0_i32_1 = arith.constant 0 : i32
    return %c0_i32, %c0_i32_0 : i32, i32
  }
  func.func @transform_1(%arg0: i32, %arg1: i32) -> (i32, i32, i32) {
    %c0_i32 = arith.constant 0 : i32
    %c0_i32_0 = arith.constant 0 : i32
    return %arg1, %arg0, %c0_i32 : i32, i32, i32
  }
  func.func @transform_2(%arg0: i32, %arg1: i32) -> (i32, i32, i32) {
    %c0_i32 = arith.constant 0 : i32
    %c0_i32_0 = arith.constant 0 : i32
    return %arg1, %arg0, %c0_i32 : i32, i32, i32
  }
}

module attributes {stable_mosaic.version = 11 : i64} {
  func.func @haar_lif_kernel(%arg0: i32, %arg1: i32, %arg2: memref<256x256xf32, #tpu.memory_space<vmem>>, %arg3: memref<1x8x256xf32, #tpu.memory_space<vmem>>, %arg4: memref<1x8x256xf32, #tpu.memory_space<vmem>>, %arg5: memref<8x256xf32, #tpu.memory_space<vmem>>) attributes {dimension_semantics = [#tpu.dimension_semantics<parallel>, #tpu.dimension_semantics<arbitrary>], iteration_bounds = array<i64: 1, 4>, scalar_prefetch = 0 : i64, scratch_operands = 1 : i64, tpu.core_type = #tpu.core_type<tc>, window_params = [{pipeline_mode = #tpu.pipeline_mode<synchronous>, transform_indices = @transform_0, window_bounds = array<i64: 256, 256>}, {transform_indices = @transform_1, window_bounds = array<i64: 1, 8, 256>}, {transform_indices = @transform_2, window_bounds = array<i64: 1, 8, 256>}]} {
    %c0_i32 = arith.constant 0 : i32
    %0 = arith.cmpi eq, %arg1, %c0_i32 : i32
    %1 = arith.extui %0 : i1 to i32
    %c0_i32_0 = arith.constant 0 : i32
    %2 = arith.cmpi ne, %1, %c0_i32_0 : i32
    scf.if %2 {
      %cst_15 = arith.constant 0.000000e+00 : f32
      %22 = vector.broadcast %cst_15 : f32 to vector<8x256xf32>
      %c0_16 = arith.constant 0 : index
      %c0_17 = arith.constant 0 : index
      %23 = vector.load %arg5[%c0_16, %c0_17] : memref<8x256xf32, #tpu.memory_space<vmem>>, vector<8x256xf32>
      tpu.vector_store %arg5[%c0_16, %c0_17], %22 {strides = array<i32>} : memref<8x256xf32, #tpu.memory_space<vmem>>, vector<8x256xf32>,
    } else {
    }
    %c0 = arith.constant 0 : index
    %c0_1 = arith.constant 0 : index
    %c0_2 = arith.constant 0 : index
    %3 = vector.load %arg3[%c0, %c0_1, %c0_2] : memref<1x8x256xf32, #tpu.memory_space<vmem>>, vector<1x8x256xf32>
    %4 = vector.shape_cast %3 : vector<1x8x256xf32> to vector<8x256xf32>
    %c0_3 = arith.constant 0 : index
    %c0_4 = arith.constant 0 : index
    %5 = vector.load %arg2[%c0_3, %c0_4] : memref<256x256xf32, #tpu.memory_space<vmem>>, vector<256x256xf32>
    %cst = arith.constant dense<0.000000e+00> : vector<8x256xf32>
    %6 = tpu.matmul %4, %5, %cst {dimension_numbers = #tpu.dot_dimension_numbers<[1], [0], [0], [1], [0, 0, 1, 1], [], []>} : vector<8x256xf32>, vector<256x256xf32>, vector<8x256xf32> -> vector<8x256xf32>
    %c0_5 = arith.constant 0 : index
    %c0_6 = arith.constant 0 : index
    %7 = vector.load %arg5[%c0_5, %c0_6] : memref<8x256xf32, #tpu.memory_space<vmem>>, vector<8x256xf32>
    %8 = arith.subf %6, %7 : vector<8x256xf32>
    %cst_7 = arith.constant 5.000000e-01 : f32
    %9 = vector.broadcast %cst_7 : f32 to vector<8x256xf32>
    %10 = arith.mulf %8, %9 : vector<8x256xf32>
    %11 = arith.addf %7, %10 : vector<8x256xf32>
    %cst_8 = arith.constant 1.000000e+00 : f32
    %12 = vector.broadcast %cst_8 : f32 to vector<8x256xf32>
    %13 = arith.cmpf ogt, %11, %12 : vector<8x256xf32>
    %14 = arith.extui %13 : vector<8x256xi1> to vector<8x256xi32>
    %15 = arith.sitofp %14 : vector<8x256xi32> to vector<8x256xf32>
    %c0_9 = arith.constant 0 : index
    %c0_10 = arith.constant 0 : index
    %c0_11 = arith.constant 0 : index
    %16 = vector.load %arg4[%c0_9, %c0_10, %c0_11] : memref<1x8x256xf32, #tpu.memory_space<vmem>>, vector<1x8x256xf32>
    %17 = vector.shape_cast %16 : vector<1x8x256xf32> to vector<8x256xf32>
    %18 = vector.shape_cast %15 : vector<8x256xf32> to vector<1x8x256xf32>
    tpu.vector_store %arg4[%c0_9, %c0_10, %c0_11], %18 {strides = array<i32>} : memref<1x8x256xf32, #tpu.memory_space<vmem>>, vector<1x8x256xf32>,
    %cst_12 = arith.constant 0.000000e+00 : f32
    %19 = vector.broadcast %cst_12 : f32 to vector<8x256xf32>
    %20 = arith.select %13, %19, %11 : vector<8x256xi1>, vector<8x256xf32>
    %c0_13 = arith.constant 0 : index
    %c0_14 = arith.constant 0 : index
    %21 = vector.load %arg5[%c0_13, %c0_14] : memref<8x256xf32, #tpu.memory_space<vmem>>, vector<8x256xf32>
    tpu.vector_store %arg5[%c0_13, %c0_14], %20 {strides = array<i32>} : memref<8x256xf32, #tpu.memory_space<vmem>>, vector<8x256xf32>,
    return
  }
  func.func @transform_0(%arg0: i32, %arg1: i32) -> (i32, i32) {
    %c0_i32 = arith.constant 0 : i32
    %c0_i32_0 = arith.constant 0 : i32
    %c0_i32_1 = arith.constant 0 : i32
    return %c0_i32, %c0_i32_0 : i32, i32
  }
  func.func @transform_1(%arg0: i32, %arg1: i32) -> (i32, i32, i32) {
    %c0_i32 = arith.constant 0 : i32
    %c0_i32_0 = arith.constant 0 : i32
    return %arg1, %arg0, %c0_i32 : i32, i32, i32
  }
  func.func @transform_2(%arg0: i32, %arg1: i32) -> (i32, i32, i32) {
    %c0_i32 = arith.constant 0 : i32
    %c0_i32_0 = arith.constant 0 : i32
    return %arg1, %arg0, %c0_i32 : i32, i32, i32
  }
}

</mosaic_0001>

<bundles_post_ra>
// kernel: tpu_custom_call.1
= control target key start
LH: loop header
LB: loop body
LE: loop exit
PB: predicated region body
PF: predicated region fallthrough
CT: control target
= control target key end

     0   :  { %7 = vsyncpa [#allocation4], 0  ;;  %s902_s0 = inlined_call_operand.hbm [shape: f32[256,256], index: 0, kind: input, shape index: {}]   ;;  %s903_s1 = inlined_call_operand.hbm [shape: f32[4,8,256], index: 1, kind: input, shape index: {}]   ;;  %s904_s2 = inlined_call_operand.hbm [shape: f32[4,8,256], index: 2, kind: output, shape index: {}]  }
   0x1   :  { %8 = vsyncpa [#allocation7], 0 }
   0x2   :  { %10 = vsyncpa [#allocation7 + $0x1], 0 }
   0x3   :  { %11 = vsyncpa [#allocation5], 0 }
   0x4   :  { %13 = vsyncpa [#allocation5 + $0x1], 0  ;;  %s751_s9 = smov 0   ;;  %s753_s10 = smov 0  }
   0x5   :  { %s755_s11 = smov 0   ;;  %s757_s12 = smov 0  }
   0x6   :  { %s759_s13 = smov 0   ;;  %s761_s14 = smov 0  }
   0x7 LB: > { %s484_s15 = sadd.s32 4294967295, %s729_s14   ;;  %p486_p0 = scmp.ge.s32.totalorder %s729_s14, 1  ;;  %s729_s14 = sphi %s761_s14, %s19_s14   ;;  %s725_s13 = sphi %s759_s13, %s915_s13   ;;  %s721_s12 = sphi %s757_s12, %s914_s12   ;;  %s717_s11 = sphi %s755_s11, %s913_s11   ;;  %s713_s10 = sphi %s753_s10, %s912_s10   ;;  %s709_s9 = sphi %s751_s9, %s911_s9  }
   0x8   : > { %p783_p1 = scmp.eq.s32.totalorder %s484_s15, 0  ;;  %p113_p2 = scmp.lt.s32.totalorder %s729_s14, 5 }
   0x9   : > { %s124_s19 = sshll.u32 %s902_s0, 4  ;;  %s731_s21 = smov [#allocation3]   ;;  %s125_s19 = int_to_ptr.hbm [resolvable:$true] %s124_s19 }
   0xa   : > { %p791_p3 = pnand %p486_p0, %p113_p2  ;;  %s126_s22 = sshll.u32 %s731_s21, 4  ;;  %s127_s22 = int_to_ptr.vmem [resolvable:$true] %s126_s22 }
   0xb   : > { %s732_s23 = smov 256   ;;  %s733_s24 = smov 16  }
   0xc   : > { %p514_p4 = pneg %p791_p3  ;;  %s485_s25 = sadd.s32 4294967294, %s729_s14  }
   0xd   : > { %s28_s26 = sadd.s32 1, %s725_s13  ;;  %s61_s27 = sadd.s32 1, %s717_s11 }
   0xe   : > { %p515_p5 = pnand %p514_p4, %p783_p1  ;;  %p29_p6 = scmp.ge.s32.totalorder %s28_s26, 4 }
   0xf   : > { %p68_p7 = scmp.ne.s32.totalorder %s717_s11, %s713_s10  ;;  %p69_p8 = scmp.eq.s32.totalorder %s729_s14, 0 }
  0x10   : > { %517 = dma.hbm_to_vmem [thread:$0]  (!%p515_p5), %s125_s19, 8192, %s127_s22, [#allocation4], %s732_s23, %s732_s23, %s733_s24  }
  0x11   : > { %p74_p9 = scmp.ne.s32.totalorder %s713_s10, %s709_s9  ;;  %s917_s26 = smov (%p29_p6, %s28_s26), 0 }
  0x12   : > { %p809_p10 = por %p69_p8, %p68_p7  ;;  %s56_s30 = ssub.s32 %s725_s13, %s917_s26 }
  0x13   : > { %p815_p11 = por %p783_p1, %p74_p9  ;;  %p100_p12 = scmp.eq.s32.totalorder %s484_s15, 3 }
  0x14   : > { %p59_p13 = scmp.eq.s32.totalorder %s56_s30, 0  ;;  %p106_p0 = scmp.eq.s32.totalorder %s485_s25, 3 }
  0x15   : > { %p821_p2 = por %p100_p12, %p68_p7  ;;  %p527_p4 = scmp.lt.s32.totalorder %s729_s14, 4 }
  0x16   : > { %s827_s4 = scalar_select %p59_p13, %s717_s11, %s61_s27  }
  0x17   : > { %p829_p5 = por %p106_p0, %p74_p9  ;;  %s140_s6 = sand.u32 1, %s717_s11  }
  0x18   : > { %s489_s7 = sshll.u32 %s140_s6, 4  ;;  %s504_s8 = sshll.u32 %s725_s13, 4 }
  0x19   : > { %s151_s15 = scalar_lea.hbm %s903_s1, %s504_s8  ;;  %s144_s19 = scalar_lea.vmem [#allocation6], %s489_s7 }
  0x1a   : > { %s155_s21 = sshll.u32 %s144_s19, 4  ;;  %s153_s22 = sshll.u32 %s151_s15, 4  ;;  %s156_s21 = int_to_ptr.vmem [resolvable:$true] %s155_s21  ;;  %s154_s22 = int_to_ptr.hbm [resolvable:$true] %s153_s22 }
  0x1b   : > { %p519_p6 = pnand %p527_p4, %p809_p10  ;;  %s141_s23 = scalar_lea.sflag [#allocation7], %s140_s6 }
  0x1c   : > { %164 = sbr.rel (%p791_p3) target bundleno = 227 (0xe3), region = 28 }
  0x1d   : > { %521 = dma.hbm_to_vmem [thread:$0]  (!%p519_p6), %s154_s22, 256, %s156_s21, %s141_s23  }
  0x21   : > { %696 = dma.done.wait (%p783_p1), [#allocation4], 8192  }
  0x22   : > { %698 = vsyncadd (%p783_p1), [#allocation4], 4294959104  ;;  %s847_s24 = sand.u32 1, %s713_s10  }
  0x23   : > { %s494_s25 = sshll.u32 %s847_s24, 4  ;;  %s172_s27 = scalar_lea.sflag [#allocation7], %s847_s24 }
  0x24   : > { %s851_s28 = scalar_lea.vmem [#allocation6], %s494_s25 }
  0x25   : > { %700 = dma.done.wait (%p815_p11), %s172_s27, 256  }
  0x26   : > { %702 = vsyncadd (%p815_p11), %s172_s27, 4294967040  ;;  %s857_s20 = scalar_lea.vmem [#allocation8], %s494_s25  ;;  %p496_p3 = scmp.ne.s32.totalorder %s721_s12, 0 }
  0x28   : > { %200 = sbr.rel (%p496_p3) target bundleno = 48 (0x30), region = 40 }
  0x2d   : > { %v734_v0 = vmov 0.0  }
  0x2e   : > { %201 = vst [vmem:[#allocation2] sm:$0xff] %v734_v0 }
  0x2f   : > { %202 = vst [vmem:[#allocation2 + $0x8] sm:$0xff] %v734_v0 }
  0x30 PF: > { %v236_v1 = vld [vmem:[#allocation3 + $0xf8] sm:$0xff]  ;;  %v234_v3 = vld [vmem:[#allocation3 + $0xe8] sm:$0xff]  ;;  %v235_v7 = vld [vmem:[#allocation3 + $0xf0] sm:$0xff]  ;;  %s505_s16 = sshll.u32 %s721_s12, 4  ;;  %s385_s7 = sshll.u32 %s857_s20, 4  ;;  %s386_s7 = int_to_ptr.vmem [resolvable:$true] %s385_s7 }
  0x31   : > { %v268_v2 = vld [vmem:[#allocation3 + $0x1f8] sm:$0xff]  ;;  %309 = vmatpush.msra.mxu2 %v236_v1  ;;  %v266_v4 = vld [vmem:[#allocation3 + $0x1e8] sm:$0xff]  ;;  %v267_v8 = vld [vmem:[#allocation3 + $0x1f0] sm:$0xff]  ;;  %269 = vmatpush.msra.mxu0 %v235_v7  ;;  %s383_s6 = scalar_lea.hbm %s904_s2, %s505_s16  ;;  %s370_s12 = scalar_lea.sflag [#allocation5], %s847_s24 }
  0x32   : > { %329 = vmatpush.msra.mxu3 %v268_v2  ;;  %v232_v5 = vld [vmem:[#allocation3 + $0xd8] sm:$0xff]  ;;  %v233_v9 = vld [vmem:[#allocation3 + $0xe0] sm:$0xff]  ;;  %289 = vmatpush.msra.mxu1 %v267_v8  ;;  %v230_v11 = vld [vmem:[#allocation3 + $0xc8] sm:$0xff]  ;;  %s387_s8 = sshll.u32 %s383_s6, 4  ;;  %s663_s21 = scalar_lea.hbm %s904_s2, 64  ;;  %s388_s8 = int_to_ptr.hbm [resolvable:$true] %s387_s8 }
  0x33   : > { %v264_v6 = vld [vmem:[#allocation3 + $0x1d8] sm:$0xff]  ;;  %310 = vmatpush.msra.mxu2 %v234_v3  ;;  %v265_v10 = vld [vmem:[#allocation3 + $0x1e0] sm:$0xff]  ;;  %v262_v12 = vld [vmem:[#allocation3 + $0x1c8] sm:$0xff]  ;;  %270 = vmatpush.msra.mxu0 %v233_v9  ;;  %s657_s17 = sshra.s32 %s388_s8, 4  ;;  %s658_s17 = int_to_ptr.hbm [resolvable:$true] %s657_s17 }
  0x34   : > { %330 = vmatpush.msra.mxu3 %v266_v4  ;;  %v231_v13 = vld [vmem:[#allocation3 + $0xd0] sm:$0xff]  ;;  %290 = vmatpush.msra.mxu1 %v265_v10  ;;  %v228_v15 = vld [vmem:[#allocation3 + $0xb8] sm:$0xff]  ;;  %v229_v17 = vld [vmem:[#allocation3 + $0xc0] sm:$0xff]  ;;  %s659_s18 = scalar_lea.hbm %s658_s17, 16  ;;  %p664_p9 = scmp.lt.s32.totalorder %s658_s17, %s904_s2 }
  0x35   : > { %311 = vmatpush.msra.mxu2 %v232_v5  ;;  %v263_v14 = vld [vmem:[#allocation3 + $0x1d0] sm:$0xff]  ;;  %v260_v16 = vld [vmem:[#allocation3 + $0x1b8] sm:$0xff]  ;;  %v261_v18 = vld [vmem:[#allocation3 + $0x1c0] sm:$0xff]  ;;  %271 = vmatpush.msra.mxu0 %v231_v13  ;;  %p660_p1 = scmp.ne.s32.totalorder %s658_s17, %s659_s18  ;;  %p665_p10 = scmp.lt.s32.totalorder %s663_s21, %s659_s18 }
  0x36   : > { %331 = vmatpush.msra.mxu3 %v264_v6  ;;  %291 = vmatpush.msra.mxu1 %v263_v14  ;;  %v226_v19 = vld [vmem:[#allocation3 + $0xa8] sm:$0xff]  ;;  %v227_v21 = vld [vmem:[#allocation3 + $0xb0] sm:$0xff]  ;;  %v224_v23 = vld [vmem:[#allocation3 + $0x98] sm:$0xff] }
  0x37   : > { %312 = vmatpush.msra.mxu2 %v230_v11  ;;  %v258_v20 = vld [vmem:[#allocation3 + $0x1a8] sm:$0xff]  ;;  %v259_v22 = vld [vmem:[#allocation3 + $0x1b0] sm:$0xff]  ;;  %272 = vmatpush.msra.mxu0 %v229_v17  ;;  %v256_v24 = vld [vmem:[#allocation3 + $0x198] sm:$0xff]  ;;  %p661_p7 = pnand %p660_p1, %p821_p2  ;;  %p666_p11 = por %p665_p10, %p664_p9 }
  0x38   : > { %332 = vmatpush.msra.mxu3 %v262_v12  ;;  %292 = vmatpush.msra.mxu1 %v261_v18  ;;  %v225_v25 = vld [vmem:[#allocation3 + $0xa0] sm:$0xff]  ;;  %v222_v27 = vld [vmem:[#allocation3 + $0x88] sm:$0xff]  ;;  %v223_v29 = vld [vmem:[#allocation3 + $0x90] sm:$0xff]  ;;  %v735_v18 = vmov 0.0  }
  0x39   : > { %313 = vmatpush.msra.mxu2 %v228_v15  ;;  %v257_v26 = vld [vmem:[#allocation3 + $0x1a0] sm:$0xff]  ;;  %273 = vmatpush.msra.mxu0 %v227_v21  ;;  %v254_v28 = vld [vmem:[#allocation3 + $0x188] sm:$0xff]  ;;  %v255_v30 = vld [vmem:[#allocation3 + $0x190] sm:$0xff]  ;;  %p662_p8 = pneg %p661_p7 }
  0x3a   : > { %333 = vmatpush.msra.mxu3 %v260_v16  ;;  %293 = vmatpush.msra.mxu1 %v259_v22  ;;  %v220_v31 = vld [vmem:[#allocation3 + $0x78] sm:$0xff]  ;;  %v221_v33 = vld [vmem:[#allocation3 + $0x80] sm:$0xff]  ;;  %v218_v35 = vld [vmem:[#allocation3 + $0x68] sm:$0xff] }
  0x3b   : > { %314 = vmatpush.msra.mxu2 %v226_v19  ;;  %274 = vmatpush.msra.mxu0 %v225_v25  ;;  %v252_v32 = vld [vmem:[#allocation3 + $0x178] sm:$0xff]  ;;  %v253_v34 = vld [vmem:[#allocation3 + $0x180] sm:$0xff]  ;;  %v250_v36 = vld [vmem:[#allocation3 + $0x168] sm:$0xff]  ;;  %p667_p12 = pnand %p666_p11, %p662_p8 }
  0x3c   : > { %334 = vmatpush.msra.mxu3 %v258_v20  ;;  %294 = vmatpush.msra.mxu1 %v257_v26  ;;  %v219_v37 = vld [vmem:[#allocation3 + $0x70] sm:$0xff]  ;;  %v216_v39 = vld [vmem:[#allocation3 + $0x58] sm:$0xff]  ;;  %v217_v41 = vld [vmem:[#allocation3 + $0x60] sm:$0xff] }
  0x3d   : > { %315 = vmatpush.msra.mxu2 %v224_v23  ;;  %275 = vmatpush.msra.mxu0 %v223_v29  ;;  %v251_v38 = vld [vmem:[#allocation3 + $0x170] sm:$0xff]  ;;  %v248_v40 = vld [vmem:[#allocation3 + $0x158] sm:$0xff]  ;;  %v249_v42 = vld [vmem:[#allocation3 + $0x160] sm:$0xff] }
  0x3e   : > { %335 = vmatpush.msra.mxu3 %v256_v24  ;;  %295 = vmatpush.msra.mxu1 %v255_v30  ;;  %v214_v43 = vld [vmem:[#allocation3 + $0x48] sm:$0xff]  ;;  %v215_v45 = vld [vmem:[#allocation3 + $0x50] sm:$0xff]  ;;  %v212_v47 = vld [vmem:[#allocation3 + $0x38] sm:$0xff] }
  0x3f   : > { %316 = vmatpush.msra.mxu2 %v222_v27  ;;  %276 = vmatpush.msra.mxu0 %v221_v33  ;;  %v246_v44 = vld [vmem:[#allocation3 + $0x148] sm:$0xff]  ;;  %v247_v46 = vld [vmem:[#allocation3 + $0x150] sm:$0xff]  ;;  %v244_v48 = vld [vmem:[#allocation3 + $0x138] sm:$0xff] }
  0x40   : > { %336 = vmatpush.msra.mxu3 %v254_v28  ;;  %296 = vmatpush.msra.mxu1 %v253_v34  ;;  %v213_v49 = vld [vmem:[#allocation3 + $0x40] sm:$0xff]  ;;  %v210_v51 = vld [vmem:[#allocation3 + $0x28] sm:$0xff]  ;;  %v211_v53 = vld [vmem:[#allocation3 + $0x30] sm:$0xff] }
  0x41   : > { %317 = vmatpush.msra.mxu2 %v220_v31  ;;  %277 = vmatpush.msra.mxu0 %v219_v37  ;;  %v245_v50 = vld [vmem:[#allocation3 + $0x140] sm:$0xff]  ;;  %v242_v52 = vld [vmem:[#allocation3 + $0x128] sm:$0xff]  ;;  %v243_v54 = vld [vmem:[#allocation3 + $0x130] sm:$0xff] }
  0x42   : > { %337 = vmatpush.msra.mxu3 %v252_v32  ;;  %297 = vmatpush.msra.mxu1 %v251_v38  ;;  %v208_v55 = vld [vmem:[#allocation3 + $0x18] sm:$0xff]  ;;  %v209_v57 = vld [vmem:[#allocation3 + $0x20] sm:$0xff]  ;;  %v206_v59 = vld [vmem:[#allocation3 + $0x8] sm:$0xff] }
  0x43   : > { %318 = vmatpush.msra.mxu2 %v218_v35  ;;  %278 = vmatpush.msra.mxu0 %v217_v41  ;;  %v240_v56 = vld [vmem:[#allocation3 + $0x118] sm:$0xff]  ;;  %v241_v58 = vld [vmem:[#allocation3 + $0x120] sm:$0xff]  ;;  %v238_v60 = vld [vmem:[#allocation3 + $0x108] sm:$0xff] }
  0x44   : > { %338 = vmatpush.msra.mxu3 %v250_v36  ;;  %298 = vmatpush.msra.mxu1 %v249_v42  ;;  %v203_v61 = vld [vmem:[%s851_s28] sm:$0xff]  ;;  %v204_v62 = vld [vmem:[%s851_s28 + $0x8] sm:$0xff] }
  0x45   : > { %319 = vmatpush.msra.mxu2 %v216_v39  ;;  %279 = vmatpush.msra.mxu0 %v215_v45  ;;  %v207_v63 = vld [vmem:[#allocation3 + $0x10] sm:$0xff]  ;;  %v205_v1 = vld [vmem:[#allocation3] sm:$0xff]  ;;  %v350_v9 = vld [vmem:[#allocation2 + $0x8] sm:$0xff] }
  0x46   : > { %339 = vmatpush.msra.mxu3 %v248_v40  ;;  %299 = vmatpush.msra.mxu1 %v247_v46  ;;  %v239_v0 = vld [vmem:[#allocation3 + $0x110] sm:$0xff]  ;;  %v237_v2 = vld [vmem:[#allocation3 + $0x100] sm:$0xff] }
  0x47   : > { %320 = vmatpush.msra.mxu2 %v214_v43  ;;  %280 = vmatpush.msra.mxu0 %v213_v49  ;;  %v349_v5 = vld [vmem:[#allocation2] sm:$0xff] }
  0x48   : > { %340 = vmatpush.msra.mxu3 %v246_v44  ;;  %300 = vmatpush.msra.mxu1 %v245_v50 }
  0x49   : > { %321 = vmatpush.msra.mxu2 %v212_v47  ;;  %281 = vmatpush.msra.mxu0 %v211_v53 }
  0x4a   : > { %341 = vmatpush.msra.mxu3 %v244_v48  ;;  %301 = vmatpush.msra.mxu1 %v243_v54 }
  0x4b   : > { %322 = vmatpush.msra.mxu2 %v210_v51  ;;  %282 = vmatpush.msra.mxu0 %v209_v57 }
  0x4c   : > { %342 = vmatpush.msra.mxu3 %v242_v52  ;;  %302 = vmatpush.msra.mxu1 %v241_v58 }
  0x4d   : > { %323 = vmatpush.msra.mxu2 %v208_v55  ;;  %283 = vmatpush.msra.mxu0 %v207_v63 }
  0x4e   : > { %343 = vmatpush.msra.mxu3 %v240_v56  ;;  %303 = vmatpush.msra.mxu1 %v239_v0 }
  0x4f   : > { %324 = vmatpush.msra.mxu2 %v206_v59  ;;  %284 = vmatpush.msra.mxu0 %v205_v1 }
  0x50   : > { %344 = vmatpush.msra.mxu3 %v238_v60  ;;  %325 = vmatmul.f32.vlgmr.msra.gmra.mxu2 %v203_v61 }
  0x51   : > { %345 = vmatmul.f32.vlgmr.msra.gmra.mxu3 %v204_v62  ;;  %304 = vmatpush.msra.mxu1 %v237_v2 }
  0x52   : > { %285 = vmatmul.f32.vlgmr.msra.gmra.mxu0 %v203_v61  ;;  %305 = vmatmul.f32.vlgmr.msra.gmra.mxu1 %v204_v62 }
  0xcf   : > { %v286_v3 = vpop.f32.mrf.mxu0  ;;  %v306_v4 = vpop.f32.mrf.mxu1 }
  0xd0   : > { %v307_v6 = vadd.f32 %v306_v4, %v286_v3 }
  0xd2   : > { %v351_v10 = vsub.f32 %v307_v6, %v349_v5 }
  0xd3   : > { %v326_v7 = vpop.f32.mrf.mxu2 }
  0xd4   : > { %v346_v8 = vpop.f32.mrf.mxu3  ;;  %v353_v12 = vmul.f32 0.5, %v351_v10 }
  0xd5   : > { %v347_v11 = vadd.f32 %v346_v8, %v326_v7 }
  0xd6   : > { %v355_v14 = vadd.f32 %v353_v12, %v349_v5 }
  0xd7   : > { %v352_v13 = vsub.f32 %v347_v11, %v350_v9 }
  0xd8   : > { %vm357_vm0 = vcmp.gt.f32.partialorder %v355_v14, 1.0 }
  0xd9   : > { %v354_v15 = vmul.f32 0.5, %v352_v13  ;;  %v365_v17 = vsel %vm357_vm0, 0.0, %v355_v14  ;;  %v497_v19 = vsel %vm357_vm0, 1.0, %v735_v18 }
  0xda   : > { %367 = vst [vmem:[#allocation2] sm:$0xff] %v365_v17 }
  0xdb   : > { %v356_v16 = vadd.f32 %v354_v15, %v350_v9  ;;  %363 = vst [vmem:[%s857_s20] sm:$0xff] %v497_v19 }
  0xdd   : > { %vm358_vm1 = vcmp.gt.f32.partialorder %v356_v16, 1.0 }
  0xde   : > { %v366_v20 = vsel %vm358_vm1, 0.0, %v356_v16  ;;  %v498_v21 = vsel %vm358_vm1, 1.0, %v735_v18 }
  0xdf   : > { %368 = vst [vmem:[#allocation2 + $0x8] sm:$0xff] %v366_v20 }
  0xe0   : > { %364 = vst [vmem:[%s857_s20 + $0x8] sm:$0xff] %v498_v21 }
  0xe1   : > { %670 = shalt.err (!%p667_p12)
}
  0xe2   : > { %512 = dma.vmem_to_hbm [thread:$0]  (%p821_p2), %s386_s7, 256, %s388_s8, %s370_s12  }
  0xe3 PF: > { %p529_p13 = scmp.ge.s32.totalorder %s729_s14, 2  ;;  %s399_s24 = sand.u32 1, %s709_s9  }
  0xe4   : > { %s400_s25 = scalar_lea.sflag [#allocation5], %s399_s24 }
  0xe5   : > { %p523_p0 = pnand %p529_p13, %p829_p5 }
  0xe7   : > { %p524_p4 = pneg %p523_p0 }
  0xe9   : > { %704 = dma.done.wait (%p524_p4), %s400_s25, 256  }
  0xea   : > { %706 = vsyncadd (%p524_p4), %s400_s25, 4294967040  ;;  %s19_s14 = sadd.s32 1, %s729_s14   ;;  %s911_s9 = smov %s713_s10 }
  0xeb   : > { %p16_p6 = scmp.ge.s32.totalorder %s19_s14, 6   ;;  %s912_s10 = smov %s717_s11 }
  0xec   : > { %s913_s11 = smov %s827_s4  ;;  %s914_s12 = smov %s725_s13 }
  0xed   : > { %s915_s13 = smov %s917_s26  ;;  %18 = sbr.rel (!%p16_p6) target bundleno = 7 (0x7), region = 82 }
  0xf2   :  { %406 = vsyncpa [#allocation4], 1 }
  0xf3   :  { %408 = vsyncpa [#allocation4 + $0x1], 1 }
  0xf4   :  { %409 = vsyncpa [#allocation7], 1 }
  0xf5   :  { %411 = vsyncpa [#allocation7 + $0x1], 1 }
  0xf6   :  { %412 = vsyncpa [#allocation5], 1 }
  0xf7   :  { %414 = vsyncpa [#allocation5 + $0x1], 1 }

// kernel: tpu_custom_call.1
= control target key start
LH: loop header
LB: loop body
LE: loop exit
PB: predicated region body
PF: predicated region fallthrough
CT: control target
= control target key end

     0   :  { %7 = vsyncpa [#allocation4], 0  ;;  %s902_s0 = inlined_call_operand.hbm [shape: f32[256,256], index: 0, kind: input, shape index: {}]   ;;  %s903_s1 = inlined_call_operand.hbm [shape: f32[4,8,256], index: 1, kind: input, shape index: {}]   ;;  %s904_s2 = inlined_call_operand.hbm [shape: f32[4,8,256], index: 2, kind: output, shape index: {}]  }
   0x1   :  { %8 = vsyncpa [#allocation7], 0 }
   0x2   :  { %10 = vsyncpa [#allocation7 + $0x1], 0 }
   0x3   :  { %11 = vsyncpa [#allocation5], 0 }
   0x4   :  { %13 = vsyncpa [#allocation5 + $0x1], 0  ;;  %s751_s9 = smov 0   ;;  %s753_s10 = smov 0  }
   0x5   :  { %s755_s11 = smov 0   ;;  %s757_s12 = smov 0  }
   0x6   :  { %s759_s13 = smov 0   ;;  %s761_s14 = smov 0  }
   0x7 LB: > { %s484_s15 = sadd.s32 4294967295, %s729_s14   ;;  %p486_p0 = scmp.ge.s32.totalorder %s729_s14, 1  ;;  %s729_s14 = sphi %s761_s14, %s19_s14   ;;  %s725_s13 = sphi %s759_s13, %s915_s13   ;;  %s721_s12 = sphi %s757_s12, %s914_s12   ;;  %s717_s11 = sphi %s755_s11, %s913_s11   ;;  %s713_s10 = sphi %s753_s10, %s912_s10   ;;  %s709_s9 = sphi %s751_s9, %s911_s9  }
   0x8   : > { %p783_p1 = scmp.eq.s32.totalorder %s484_s15, 0  ;;  %p113_p2 = scmp.lt.s32.totalorder %s729_s14, 5 }
   0x9   : > { %s124_s19 = sshll.u32 %s902_s0, 4  ;;  %s731_s21 = smov [#allocation3]   ;;  %s125_s19 = int_to_ptr.hbm [resolvable:$true] %s124_s19 }
   0xa   : > { %p791_p3 = pnand %p486_p0, %p113_p2  ;;  %s126_s22 = sshll.u32 %s731_s21, 4  ;;  %s127_s22 = int_to_ptr.vmem [resolvable:$true] %s126_s22 }
   0xb   : > { %s732_s23 = smov 256   ;;  %s733_s24 = smov 16  }
   0xc   : > { %p514_p4 = pneg %p791_p3  ;;  %s485_s25 = sadd.s32 4294967294, %s729_s14  }
   0xd   : > { %s28_s26 = sadd.s32 1, %s725_s13  ;;  %s61_s27 = sadd.s32 1, %s717_s11 }
   0xe   : > { %p515_p5 = pnand %p514_p4, %p783_p1  ;;  %p29_p6 = scmp.ge.s32.totalorder %s28_s26, 4 }
   0xf   : > { %p68_p7 = scmp.ne.s32.totalorder %s717_s11, %s713_s10  ;;  %p69_p8 = scmp.eq.s32.totalorder %s729_s14, 0 }
  0x10   : > { %517 = dma.hbm_to_vmem [thread:$0]  (!%p515_p5), %s125_s19, 8192, %s127_s22, [#allocation4], %s732_s23, %s732_s23, %s733_s24  }
  0x11   : > { %p74_p9 = scmp.ne.s32.totalorder %s713_s10, %s709_s9  ;;  %s917_s26 = smov (%p29_p6, %s28_s26), 0 }
  0x12   : > { %p809_p10 = por %p69_p8, %p68_p7  ;;  %s56_s30 = ssub.s32 %s725_s13, %s917_s26 }
  0x13   : > { %p815_p11 = por %p783_p1, %p74_p9  ;;  %p100_p12 = scmp.eq.s32.totalorder %s484_s15, 3 }
  0x14   : > { %p59_p13 = scmp.eq.s32.totalorder %s56_s30, 0  ;;  %p106_p0 = scmp.eq.s32.totalorder %s485_s25, 3 }
  0x15   : > { %p821_p2 = por %p100_p12, %p68_p7  ;;  %p527_p4 = scmp.lt.s32.totalorder %s729_s14, 4 }
  0x16   : > { %s827_s4 = scalar_select %p59_p13, %s717_s11, %s61_s27  }
  0x17   : > { %p829_p5 = por %p106_p0, %p74_p9  ;;  %s140_s6 = sand.u32 1, %s717_s11  }
  0x18   : > { %s489_s7 = sshll.u32 %s140_s6, 4  ;;  %s504_s8 = sshll.u32 %s725_s13, 4 }
  0x19   : > { %s151_s15 = scalar_lea.hbm %s903_s1, %s504_s8  ;;  %s144_s19 = scalar_lea.vmem [#allocation6], %s489_s7 }
  0x1a   : > { %s155_s21 = sshll.u32 %s144_s19, 4  ;;  %s153_s22 = sshll.u32 %s151_s15, 4  ;;  %s156_s21 = int_to_ptr.vmem [resolvable:$true] %s155_s21  ;;  %s154_s22 = int_to_ptr.hbm [resolvable:$true] %s153_s22 }
  0x1b   : > { %p519_p6 = pnand %p527_p4, %p809_p10  ;;  %s141_s23 = scalar_lea.sflag [#allocation7], %s140_s6 }
  0x1c   : > { %164 = sbr.rel (%p791_p3) target bundleno = 227 (0xe3), region = 28 }
  0x1d   : > { %521 = dma.hbm_to_vmem [thread:$0]  (!%p519_p6), %s154_s22, 256, %s156_s21, %s141_s23  }
  0x21   : > { %696 = dma.done.wait (%p783_p1), [#allocation4], 8192  }
  0x22   : > { %698 = vsyncadd (%p783_p1), [#allocation4], 4294959104  ;;  %s847_s24 = sand.u32 1, %s713_s10  }
  0x23   : > { %s494_s25 = sshll.u32 %s847_s24, 4  ;;  %s172_s27 = scalar_lea.sflag [#allocation7], %s847_s24 }
  0x24   : > { %s851_s28 = scalar_lea.vmem [#allocation6], %s494_s25 }
  0x25   : > { %700 = dma.done.wait (%p815_p11), %s172_s27, 256  }
  0x26   : > { %702 = vsyncadd (%p815_p11), %s172_s27, 4294967040  ;;  %s857_s20 = scalar_lea.vmem [#allocation8], %s494_s25  ;;  %p496_p3 = scmp.ne.s32.totalorder %s721_s12, 0 }
  0x28   : > { %200 = sbr.rel (%p496_p3) target bundleno = 48 (0x30), region = 40 }
  0x2d   : > { %v734_v0 = vmov 0.0  }
  0x2e   : > { %201 = vst [vmem:[#allocation2] sm:$0xff] %v734_v0 }
  0x2f   : > { %202 = vst [vmem:[#allocation2 + $0x8] sm:$0xff] %v734_v0 }
  0x30 PF: > { %v236_v1 = vld [vmem:[#allocation3 + $0xf8] sm:$0xff]  ;;  %v234_v3 = vld [vmem:[#allocation3 + $0xe8] sm:$0xff]  ;;  %v235_v7 = vld [vmem:[#allocation3 + $0xf0] sm:$0xff]  ;;  %s505_s16 = sshll.u32 %s721_s12, 4  ;;  %s385_s7 = sshll.u32 %s857_s20, 4  ;;  %s386_s7 = int_to_ptr.vmem [resolvable:$true] %s385_s7 }
  0x31   : > { %v268_v2 = vld [vmem:[#allocation3 + $0x1f8] sm:$0xff]  ;;  %309 = vmatpush.msra.mxu2 %v236_v1  ;;  %v266_v4 = vld [vmem:[#allocation3 + $0x1e8] sm:$0xff]  ;;  %v267_v8 = vld [vmem:[#allocation3 + $0x1f0] sm:$0xff]  ;;  %269 = vmatpush.msra.mxu0 %v235_v7  ;;  %s383_s6 = scalar_lea.hbm %s904_s2, %s505_s16  ;;  %s370_s12 = scalar_lea.sflag [#allocation5], %s847_s24 }
  0x32   : > { %329 = vmatpush.msra.mxu3 %v268_v2  ;;  %v232_v5 = vld [vmem:[#allocation3 + $0xd8] sm:$0xff]  ;;  %v233_v9 = vld [vmem:[#allocation3 + $0xe0] sm:$0xff]  ;;  %289 = vmatpush.msra.mxu1 %v267_v8  ;;  %v230_v11 = vld [vmem:[#allocation3 + $0xc8] sm:$0xff]  ;;  %s387_s8 = sshll.u32 %s383_s6, 4  ;;  %s663_s21 = scalar_lea.hbm %s904_s2, 64  ;;  %s388_s8 = int_to_ptr.hbm [resolvable:$true] %s387_s8 }
  0x33   : > { %v264_v6 = vld [vmem:[#allocation3 + $0x1d8] sm:$0xff]  ;;  %310 = vmatpush.msra.mxu2 %v234_v3  ;;  %v265_v10 = vld [vmem:[#allocation3 + $0x1e0] sm:$0xff]  ;;  %v262_v12 = vld [vmem:[#allocation3 + $0x1c8] sm:$0xff]  ;;  %270 = vmatpush.msra.mxu0 %v233_v9  ;;  %s657_s17 = sshra.s32 %s388_s8, 4  ;;  %s658_s17 = int_to_ptr.hbm [resolvable:$true] %s657_s17 }
  0x34   : > { %330 = vmatpush.msra.mxu3 %v266_v4  ;;  %v231_v13 = vld [vmem:[#allocation3 + $0xd0] sm:$0xff]  ;;  %290 = vmatpush.msra.mxu1 %v265_v10  ;;  %v228_v15 = vld [vmem:[#allocation3 + $0xb8] sm:$0xff]  ;;  %v229_v17 = vld [vmem:[#allocation3 + $0xc0] sm:$0xff]  ;;  %s659_s18 = scalar_lea.hbm %s658_s17, 16  ;;  %p664_p9 = scmp.lt.s32.totalorder %s658_s17, %s904_s2 }
  0x35   : > { %311 = vmatpush.msra.mxu2 %v232_v5  ;;  %v263_v14 = vld [vmem:[#allocation3 + $0x1d0] sm:$0xff]  ;;  %v260_v16 = vld [vmem:[#allocation3 + $0x1b8] sm:$0xff]  ;;  %v261_v18 = vld [vmem:[#allocation3 + $0x1c0] sm:$0xff]  ;;  %271 = vmatpush.msra.mxu0 %v231_v13  ;;  %p660_p1 = scmp.ne.s32.totalorder %s658_s17, %s659_s18  ;;  %p665_p10 = scmp.lt.s32.totalorder %s663_s21, %s659_s18 }
  0x36   : > { %331 = vmatpush.msra.mxu3 %v264_v6  ;;  %291 = vmatpush.msra.mxu1 %v263_v14  ;;  %v226_v19 = vld [vmem:[#allocation3 + $0xa8] sm:$0xff]  ;;  %v227_v21 = vld [vmem:[#allocation3 + $0xb0] sm:$0xff]  ;;  %v224_v23 = vld [vmem:[#allocation3 + $0x98] sm:$0xff] }
  0x37   : > { %312 = vmatpush.msra.mxu2 %v230_v11  ;;  %v258_v20 = vld [vmem:[#allocation3 + $0x1a8] sm:$0xff]  ;;  %v259_v22 = vld [vmem:[#allocation3 + $0x1b0] sm:$0xff]  ;;  %272 = vmatpush.msra.mxu0 %v229_v17  ;;  %v256_v24 = vld [vmem:[#allocation3 + $0x198] sm:$0xff]  ;;  %p661_p7 = pnand %p660_p1, %p821_p2  ;;  %p666_p11 = por %p665_p10, %p664_p9 }
  0x38   : > { %332 = vmatpush.msra.mxu3 %v262_v12  ;;  %292 = vmatpush.msra.mxu1 %v261_v18  ;;  %v225_v25 = vld [vmem:[#allocation3 + $0xa0] sm:$0xff]  ;;  %v222_v27 = vld [vmem:[#allocation3 + $0x88] sm:$0xff]  ;;  %v223_v29 = vld [vmem:[#allocation3 + $0x90] sm:$0xff]  ;;  %v735_v18 = vmov 0.0  }
  0x39   : > { %313 = vmatpush.msra.mxu2 %v228_v15  ;;  %v257_v26 = vld [vmem:[#allocation3 + $0x1a0] sm:$0xff]  ;;  %273 = vmatpush.msra.mxu0 %v227_v21  ;;  %v254_v28 = vld [vmem:[#allocation3 + $0x188] sm:$0xff]  ;;  %v255_v30 = vld [vmem:[#allocation3 + $0x190] sm:$0xff]  ;;  %p662_p8 = pneg %p661_p7 }
  0x3a   : > { %333 = vmatpush.msra.mxu3 %v260_v16  ;;  %293 = vmatpush.msra.mxu1 %v259_v22  ;;  %v220_v31 = vld [vmem:[#allocation3 + $0x78] sm:$0xff]  ;;  %v221_v33 = vld [vmem:[#allocation3 + $0x80] sm:$0xff]  ;;  %v218_v35 = vld [vmem:[#allocation3 + $0x68] sm:$0xff] }
  0x3b   : > { %314 = vmatpush.msra.mxu2 %v226_v19  ;;  %274 = vmatpush.msra.mxu0 %v225_v25  ;;  %v252_v32 = vld [vmem:[#allocation3 + $0x178] sm:$0xff]  ;;  %v253_v34 = vld [vmem:[#allocation3 + $0x180] sm:$0xff]  ;;  %v250_v36 = vld [vmem:[#allocation3 + $0x168] sm:$0xff]  ;;  %p667_p12 = pnand %p666_p11, %p662_p8 }
  0x3c   : > { %334 = vmatpush.msra.mxu3 %v258_v20  ;;  %294 = vmatpush.msra.mxu1 %v257_v26  ;;  %v219_v37 = vld [vmem:[#allocation3 + $0x70] sm:$0xff]  ;;  %v216_v39 = vld [vmem:[#allocation3 + $0x58] sm:$0xff]  ;;  %v217_v41 = vld [vmem:[#allocation3 + $0x60] sm:$0xff] }
  0x3d   : > { %315 = vmatpush.msra.mxu2 %v224_v23  ;;  %275 = vmatpush.msra.mxu0 %v223_v29  ;;  %v251_v38 = vld [vmem:[#allocation3 + $0x170] sm:$0xff]  ;;  %v248_v40 = vld [vmem:[#allocation3 + $0x158] sm:$0xff]  ;;  %v249_v42 = vld [vmem:[#allocation3 + $0x160] sm:$0xff] }
  0x3e   : > { %335 = vmatpush.msra.mxu3 %v256_v24  ;;  %295 = vmatpush.msra.mxu1 %v255_v30  ;;  %v214_v43 = vld [vmem:[#allocation3 + $0x48] sm:$0xff]  ;;  %v215_v45 = vld [vmem:[#allocation3 + $0x50] sm:$0xff]  ;;  %v212_v47 = vld [vmem:[#allocation3 + $0x38] sm:$0xff] }
  0x3f   : > { %316 = vmatpush.msra.mxu2 %v222_v27  ;;  %276 = vmatpush.msra.mxu0 %v221_v33  ;;  %v246_v44 = vld [vmem:[#allocation3 + $0x148] sm:$0xff]  ;;  %v247_v46 = vld [vmem:[#allocation3 + $0x150] sm:$0xff]  ;;  %v244_v48 = vld [vmem:[#allocation3 + $0x138] sm:$0xff] }
  0x40   : > { %336 = vmatpush.msra.mxu3 %v254_v28  ;;  %296 = vmatpush.msra.mxu1 %v253_v34  ;;  %v213_v49 = vld [vmem:[#allocation3 + $0x40] sm:$0xff]  ;;  %v210_v51 = vld [vmem:[#allocation3 + $0x28] sm:$0xff]  ;;  %v211_v53 = vld [vmem:[#allocation3 + $0x30] sm:$0xff] }
  0x41   : > { %317 = vmatpush.msra.mxu2 %v220_v31  ;;  %277 = vmatpush.msra.mxu0 %v219_v37  ;;  %v245_v50 = vld [vmem:[#allocation3 + $0x140] sm:$0xff]  ;;  %v242_v52 = vld [vmem:[#allocation3 + $0x128] sm:$0xff]  ;;  %v243_v54 = vld [vmem:[#allocation3 + $0x130] sm:$0xff] }
  0x42   : > { %337 = vmatpush.msra.mxu3 %v252_v32  ;;  %297 = vmatpush.msra.mxu1 %v251_v38  ;;  %v208_v55 = vld [vmem:[#allocation3 + $0x18] sm:$0xff]  ;;  %v209_v57 = vld [vmem:[#allocation3 + $0x20] sm:$0xff]  ;;  %v206_v59 = vld [vmem:[#allocation3 + $0x8] sm:$0xff] }
  0x43   : > { %318 = vmatpush.msra.mxu2 %v218_v35  ;;  %278 = vmatpush.msra.mxu0 %v217_v41  ;;  %v240_v56 = vld [vmem:[#allocation3 + $0x118] sm:$0xff]  ;;  %v241_v58 = vld [vmem:[#allocation3 + $0x120] sm:$0xff]  ;;  %v238_v60 = vld [vmem:[#allocation3 + $0x108] sm:$0xff] }
  0x44   : > { %338 = vmatpush.msra.mxu3 %v250_v36  ;;  %298 = vmatpush.msra.mxu1 %v249_v42  ;;  %v203_v61 = vld [vmem:[%s851_s28] sm:$0xff]  ;;  %v204_v62 = vld [vmem:[%s851_s28 + $0x8] sm:$0xff] }
  0x45   : > { %319 = vmatpush.msra.mxu2 %v216_v39  ;;  %279 = vmatpush.msra.mxu0 %v215_v45  ;;  %v207_v63 = vld [vmem:[#allocation3 + $0x10] sm:$0xff]  ;;  %v205_v1 = vld [vmem:[#allocation3] sm:$0xff]  ;;  %v350_v9 = vld [vmem:[#allocation2 + $0x8] sm:$0xff] }
  0x46   : > { %339 = vmatpush.msra.mxu3 %v248_v40  ;;  %299 = vmatpush.msra.mxu1 %v247_v46  ;;  %v239_v0 = vld [vmem:[#allocation3 + $0x110] sm:$0xff]  ;;  %v237_v2 = vld [vmem:[#allocation3 + $0x100] sm:$0xff] }
  0x47   : > { %320 = vmatpush.msra.mxu2 %v214_v43  ;;  %280 = vmatpush.msra.mxu0 %v213_v49  ;;  %v349_v5 = vld [vmem:[#allocation2] sm:$0xff] }
  0x48   : > { %340 = vmatpush.msra.mxu3 %v246_v44  ;;  %300 = vmatpush.msra.mxu1 %v245_v50 }
  0x49   : > { %321 = vmatpush.msra.mxu2 %v212_v47  ;;  %281 = vmatpush.msra.mxu0 %v211_v53 }
  0x4a   : > { %341 = vmatpush.msra.mxu3 %v244_v48  ;;  %301 = vmatpush.msra.mxu1 %v243_v54 }
  0x4b   : > { %322 = vmatpush.msra.mxu2 %v210_v51  ;;  %282 = vmatpush.msra.mxu0 %v209_v57 }
  0x4c   : > { %342 = vmatpush.msra.mxu3 %v242_v52  ;;  %302 = vmatpush.msra.mxu1 %v241_v58 }
  0x4d   : > { %323 = vmatpush.msra.mxu2 %v208_v55  ;;  %283 = vmatpush.msra.mxu0 %v207_v63 }
  0x4e   : > { %343 = vmatpush.msra.mxu3 %v240_v56  ;;  %303 = vmatpush.msra.mxu1 %v239_v0 }
  0x4f   : > { %324 = vmatpush.msra.mxu2 %v206_v59  ;;  %284 = vmatpush.msra.mxu0 %v205_v1 }
  0x50   : > { %344 = vmatpush.msra.mxu3 %v238_v60  ;;  %325 = vmatmul.f32.vlgmr.msra.gmra.mxu2 %v203_v61 }
  0x51   : > { %345 = vmatmul.f32.vlgmr.msra.gmra.mxu3 %v204_v62  ;;  %304 = vmatpush.msra.mxu1 %v237_v2 }
  0x52   : > { %285 = vmatmul.f32.vlgmr.msra.gmra.mxu0 %v203_v61  ;;  %305 = vmatmul.f32.vlgmr.msra.gmra.mxu1 %v204_v62 }
  0xcf   : > { %v286_v3 = vpop.f32.mrf.mxu0  ;;  %v306_v4 = vpop.f32.mrf.mxu1 }
  0xd0   : > { %v307_v6 = vadd.f32 %v306_v4, %v286_v3 }
  0xd2   : > { %v351_v10 = vsub.f32 %v307_v6, %v349_v5 }
  0xd3   : > { %v326_v7 = vpop.f32.mrf.mxu2 }
  0xd4   : > { %v346_v8 = vpop.f32.mrf.mxu3  ;;  %v353_v12 = vmul.f32 0.5, %v351_v10 }
  0xd5   : > { %v347_v11 = vadd.f32 %v346_v8, %v326_v7 }
  0xd6   : > { %v355_v14 = vadd.f32 %v353_v12, %v349_v5 }
  0xd7   : > { %v352_v13 = vsub.f32 %v347_v11, %v350_v9 }
  0xd8   : > { %vm357_vm0 = vcmp.gt.f32.partialorder %v355_v14, 1.0 }
  0xd9   : > { %v354_v15 = vmul.f32 0.5, %v352_v13  ;;  %v365_v17 = vsel %vm357_vm0, 0.0, %v355_v14  ;;  %v497_v19 = vsel %vm357_vm0, 1.0, %v735_v18 }
  0xda   : > { %367 = vst [vmem:[#allocation2] sm:$0xff] %v365_v17 }
  0xdb   : > { %v356_v16 = vadd.f32 %v354_v15, %v350_v9  ;;  %363 = vst [vmem:[%s857_s20] sm:$0xff] %v497_v19 }
  0xdd   : > { %vm358_vm1 = vcmp.gt.f32.partialorder %v356_v16, 1.0 }
  0xde   : > { %v366_v20 = vsel %vm358_vm1, 0.0, %v356_v16  ;;  %v498_v21 = vsel %vm358_vm1, 1.0, %v735_v18 }
  0xdf   : > { %368 = vst [vmem:[#allocation2 + $0x8] sm:$0xff] %v366_v20 }
  0xe0   : > { %364 = vst [vmem:[%s857_s20 + $0x8] sm:$0xff] %v498_v21 }
  0xe1   : > { %670 = shalt.err (!%p667_p12)
}
  0xe2   : > { %512 = dma.vmem_to_hbm [thread:$0]  (%p821_p2), %s386_s7, 256, %s388_s8, %s370_s12  }
  0xe3 PF: > { %p529_p13 = scmp.ge.s32.totalorder %s729_s14, 2  ;;  %s399_s24 = sand.u32 1, %s709_s9  }
  0xe4   : > { %s400_s25 = scalar_lea.sflag [#allocation5], %s399_s24 }
  0xe5   : > { %p523_p0 = pnand %p529_p13, %p829_p5 }
  0xe7   : > { %p524_p4 = pneg %p523_p0 }
  0xe9   : > { %704 = dma.done.wait (%p524_p4), %s400_s25, 256  }
  0xea   : > { %706 = vsyncadd (%p524_p4), %s400_s25, 4294967040  ;;  %s19_s14 = sadd.s32 1, %s729_s14   ;;  %s911_s9 = smov %s713_s10 }
  0xeb   : > { %p16_p6 = scmp.ge.s32.totalorder %s19_s14, 6   ;;  %s912_s10 = smov %s717_s11 }
  0xec   : > { %s913_s11 = smov %s827_s4  ;;  %s914_s12 = smov %s725_s13 }
  0xed   : > { %s915_s13 = smov %s917_s26  ;;  %18 = sbr.rel (!%p16_p6) target bundleno = 7 (0x7), region = 82 }
  0xf2   :  { %406 = vsyncpa [#allocation4], 1 }
  0xf3   :  { %408 = vsyncpa [#allocation4 + $0x1], 1 }
  0xf4   :  { %409 = vsyncpa [#allocation7], 1 }
  0xf5   :  { %411 = vsyncpa [#allocation7 + $0x1], 1 }
  0xf6   :  { %412 = vsyncpa [#allocation5], 1 }
  0xf7   :  { %414 = vsyncpa [#allocation5 + $0x1], 1 }

</bundles_post_ra>
